<compile_context>
chip_gen: v5e
topology: v5e:2x2
jax: 0.10.0
libtpu: 0.0.40
codegen_flags: <defaults>
</compile_context>

<pallas_src>
import functools

import jax
import jax.numpy as jnp
from jax import lax
from jax.experimental import pallas as pl
from jax.experimental.pallas import tpu as pltpu

LANE = 128  # TPU vreg lane width


# ---------------------------------------------------------------------------
# Single fused kernel: (discarded) batched matmul + embedding lookup.
# No grid: runs once, all refs are whole arrays resident in VMEM.
# ---------------------------------------------------------------------------
def _fused_kernel(batch, seq, ids_ref, t1_ref, t2_ref, table_ref,
                  bmm_ref, emb_ref):
    # ---- 1) discarded batched matmul: tensor1 @ tensor2 --------------------
    # bf16 in / bf16 out (value is never read); unrolled over the tiny batch.
    B = t1_ref.shape[0]
    for b in range(B):
        bmm_ref[b] = jnp.dot(
            t1_ref[b], t2_ref[b],
            preferred_element_type=jnp.float32).astype(bmm_ref.dtype)

    # ---- 2) embedding lookup: out = wte(x) ----------------------------------
    ids = ids_ref[...]                       # (T, 1) int32, T = batch*seq
    table = table_ref[...]                   # (V, Dp) f32, Dp multiple of 128
    T = ids.shape[0]
    V = table.shape[0]
    vocab_iota = lax.broadcasted_iota(jnp.int32, (T, V), 1)
    onehot = (vocab_iota == ids).astype(table.dtype)                 # (T, V)
    # Exact row selection: f32 table, f32 accumulation.
    emb = jnp.dot(onehot, table, preferred_element_type=jnp.float32)  # (T, Dp)
    # Store directly at (batch, seq, Dp); seq is a multiple of 8 so each slab
    # is aligned full vregs -> unmasked lane-dense stores.
    for b in range(batch):
        emb_ref[b] = emb[b * seq:(b + 1) * seq, :]


# ---------------------------------------------------------------------------
# Test_Model equivalent
# ---------------------------------------------------------------------------
class TestModelPallas:
    def __init__(self, vocab_size, embed_dim, key, *, B=2, M=128, N=256, K=128):
        k1, k2, k3 = jax.random.split(key, 3)
        self.embed_dim = embed_dim
        # nn.Embedding(vocab_size, embed_dim) weight (deterministic synthetic init)
        self.wte = jax.random.normal(k1, (vocab_size, embed_dim), jnp.float32)
        # Lane-pad the table columns to a multiple of 128 for dense stores.
        self.Dp = pl.cdiv(embed_dim, LANE) * LANE
        self.wte_padded = jnp.pad(self.wte, ((0, 0), (0, self.Dp - embed_dim)))
        # torch.randn(10, m, n) / (10, n, k) scaled down to SMALL shapes.
        # bf16: result is discarded, precision irrelevant, half the DMA bytes.
        self.tensor1 = jax.random.normal(k2, (B, M, N), jnp.float32).astype(jnp.bfloat16)
        self.tensor2 = jax.random.normal(k3, (B, N, K), jnp.float32).astype(jnp.bfloat16)
        self._fwd = jax.jit(self._forward_impl)
        self._discarded = None

    def _forward_impl(self, x, t1, t2, table_padded):
        batch, seq = x.shape
        T = batch * seq
        assert T % 8 == 0 and seq % 8 == 0
        ids2d = x.reshape(T, 1).astype(jnp.int32)

        B, M, _ = t1.shape
        K = t2.shape[2]
        V, Dp = table_padded.shape

        kernel = functools.partial(_fused_kernel, batch, seq)
        vmem = lambda: pl.BlockSpec(memory_space=pltpu.MemorySpace.VMEM)

        discarded, emb = pl.pallas_call(
            kernel,
            out_shape=(
                jax.ShapeDtypeStruct((B, M, K), jnp.bfloat16),        # discarded
                jax.ShapeDtypeStruct((batch, seq, Dp), table_padded.dtype),
            ),
            in_specs=[vmem(), vmem(), vmem(), vmem()],
            out_specs=(vmem(), vmem()),
        )(ids2d, t1, t2, table_padded)

        # Slice off the lane padding at the consumer (cheap; keeps all kernel
        # stores lane-dense).
        out = emb[..., :self.embed_dim]
        return discarded, out

    def forward(self, x):
        discarded, out = self._fwd(x, self.tensor1, self.tensor2, self.wte_padded)
        # Keep the "computed then discarded" matmul result alive (never read).
        self._discarded = discarded
        return out


if __name__ == "__main__":
    key = jax.random.PRNGKey(0)
    k_model, k_x = jax.random.split(key)

    vocab_size, embed_dim = 32, 64          # embTableSize default '32x64'
    batch, seq = 2, 8                       # T = 16 (multiple of 8)

    model = TestModelPallas(vocab_size, embed_dim, k_model)
    x = jax.random.randint(k_x, (batch, seq), 0, vocab_size, dtype=jnp.int32)

    out = model.forward(x)
    jax.block_until_ready(out)
    jax.block_until_ready(model._discarded)

    # sanity check vs. pure-JAX embedding gather
    ref = jnp.take(model.wte, x, axis=0)
    assert out.shape == (batch, seq, embed_dim)
    assert jnp.allclose(out, ref, atol=1e-5), "embedding mismatch"
    assert model._discarded.shape == (2, 128, 128)

    print("KERNEL_OK")
</pallas_src>

<mosaic_0001>
module attributes {stable_mosaic.version = 11 : i64} {
  func.func @_fused_kernel(%arg0: memref<16x1xi32, #tpu.memory_space<vmem>>, %arg1: memref<2x128x256xbf16, #tpu.memory_space<vmem>>, %arg2: memref<2x256x128xbf16, #tpu.memory_space<vmem>>, %arg3: memref<32x128xf32, #tpu.memory_space<vmem>>, %arg4: memref<2x128x128xbf16, #tpu.memory_space<vmem>>, %arg5: memref<2x8x128xf32, #tpu.memory_space<vmem>>) attributes {dimension_semantics = [], scalar_prefetch = 0 : i64, scratch_operands = 0 : i64, tpu.core_type = #tpu.core_type<tc>} {
    %c0 = arith.constant 0 : index
    %c0_0 = arith.constant 0 : index
    %c0_1 = arith.constant 0 : index
    %0 = vector.load %arg1[%c0, %c0_0, %c0_1] : memref<2x128x256xbf16, #tpu.memory_space<vmem>>, vector<1x128x256xbf16>
    %1 = vector.shape_cast %0 : vector<1x128x256xbf16> to vector<128x256xbf16>
    %c0_2 = arith.constant 0 : index
    %c0_3 = arith.constant 0 : index
    %c0_4 = arith.constant 0 : index
    %2 = vector.load %arg2[%c0_2, %c0_3, %c0_4] : memref<2x256x128xbf16, #tpu.memory_space<vmem>>, vector<1x256x128xbf16>
    %3 = vector.shape_cast %2 : vector<1x256x128xbf16> to vector<256x128xbf16>
    %cst = arith.constant dense<0.000000e+00> : vector<128x128xf32>
    %4 = tpu.matmul %1, %3, %cst {dimension_numbers = #tpu.dot_dimension_numbers<[1], [0], [0], [1], [0, 0, 1, 1], [], []>} : vector<128x256xbf16>, vector<256x128xbf16>, vector<128x128xf32> -> vector<128x128xf32>
    %5 = arith.truncf %4 : vector<128x128xf32> to vector<128x128xbf16>
    %c0_5 = arith.constant 0 : index
    %c0_6 = arith.constant 0 : index
    %c0_7 = arith.constant 0 : index
    %6 = vector.load %arg4[%c0_5, %c0_6, %c0_7] : memref<2x128x128xbf16, #tpu.memory_space<vmem>>, vector<1x128x128xbf16>
    %7 = vector.shape_cast %6 : vector<1x128x128xbf16> to vector<128x128xbf16>
    %8 = vector.shape_cast %5 : vector<128x128xbf16> to vector<1x128x128xbf16>
    tpu.vector_store %arg4[%c0_5, %c0_6, %c0_7], %8 {strides = array<i32>} : memref<2x128x128xbf16, #tpu.memory_space<vmem>>, vector<1x128x128xbf16>,
    %c1 = arith.constant 1 : index
    %c0_8 = arith.constant 0 : index
    %c0_9 = arith.constant 0 : index
    %9 = vector.load %arg1[%c1, %c0_8, %c0_9] : memref<2x128x256xbf16, #tpu.memory_space<vmem>>, vector<1x128x256xbf16>
    %10 = vector.shape_cast %9 : vector<1x128x256xbf16> to vector<128x256xbf16>
    %c1_10 = arith.constant 1 : index
    %c0_11 = arith.constant 0 : index
    %c0_12 = arith.constant 0 : index
    %11 = vector.load %arg2[%c1_10, %c0_11, %c0_12] : memref<2x256x128xbf16, #tpu.memory_space<vmem>>, vector<1x256x128xbf16>
    %12 = vector.shape_cast %11 : vector<1x256x128xbf16> to vector<256x128xbf16>
    %cst_13 = arith.constant dense<0.000000e+00> : vector<128x128xf32>
    %13 = tpu.matmul %10, %12, %cst_13 {dimension_numbers = #tpu.dot_dimension_numbers<[1], [0], [0], [1], [0, 0, 1, 1], [], []>} : vector<128x256xbf16>, vector<256x128xbf16>, vector<128x128xf32> -> vector<128x128xf32>
    %14 = arith.truncf %13 : vector<128x128xf32> to vector<128x128xbf16>
    %c1_14 = arith.constant 1 : index
    %c0_15 = arith.constant 0 : index
    %c0_16 = arith.constant 0 : index
    %15 = vector.load %arg4[%c1_14, %c0_15, %c0_16] : memref<2x128x128xbf16, #tpu.memory_space<vmem>>, vector<1x128x128xbf16>
    %16 = vector.shape_cast %15 : vector<1x128x128xbf16> to vector<128x128xbf16>
    %17 = vector.shape_cast %14 : vector<128x128xbf16> to vector<1x128x128xbf16>
    tpu.vector_store %arg4[%c1_14, %c0_15, %c0_16], %17 {strides = array<i32>} : memref<2x128x128xbf16, #tpu.memory_space<vmem>>, vector<1x128x128xbf16>,
    %c0_17 = arith.constant 0 : index
    %c0_18 = arith.constant 0 : index
    %18 = vector.load %arg0[%c0_17, %c0_18] : memref<16x1xi32, #tpu.memory_space<vmem>>, vector<16x1xi32>
    %c0_19 = arith.constant 0 : index
    %c0_20 = arith.constant 0 : index
    %19 = vector.load %arg3[%c0_19, %c0_20] : memref<32x128xf32, #tpu.memory_space<vmem>>, vector<32x128xf32>
    %20 = tpu.iota {dimensions = array<i32: 1>} : vector<16x32xi32>
    %21 = vector.broadcast %18 : vector<16x1xi32> to vector<16x32xi32>
    %22 = arith.cmpi eq, %20, %21 : vector<16x32xi32>
    %23 = arith.extui %22 : vector<16x32xi1> to vector<16x32xi32>
    %24 = arith.sitofp %23 : vector<16x32xi32> to vector<16x32xf32>
    %cst_21 = arith.constant dense<0.000000e+00> : vector<16x128xf32>
    %25 = tpu.matmul %24, %19, %cst_21 {dimension_numbers = #tpu.dot_dimension_numbers<[1], [0], [0], [1], [0, 0, 1, 1], [], []>} : vector<16x32xf32>, vector<32x128xf32>, vector<16x128xf32> -> vector<16x128xf32>
    %26 = vector.extract_strided_slice %25 {offsets = [0, 0], sizes = [8, 128], strides = [1, 1]} : vector<16x128xf32> to vector<8x128xf32>
    %c0_22 = arith.constant 0 : index
    %c0_23 = arith.constant 0 : index
    %c0_24 = arith.constant 0 : index
    %27 = vector.load %arg5[%c0_22, %c0_23, %c0_24] : memref<2x8x128xf32, #tpu.memory_space<vmem>>, vector<1x8x128xf32>
    %28 = vector.shape_cast %27 : vector<1x8x128xf32> to vector<8x128xf32>
    %29 = vector.shape_cast %26 : vector<8x128xf32> to vector<1x8x128xf32>
    tpu.vector_store %arg5[%c0_22, %c0_23, %c0_24], %29 {strides = array<i32>} : memref<2x8x128xf32, #tpu.memory_space<vmem>>, vector<1x8x128xf32>,
    %30 = vector.extract_strided_slice %25 {offsets = [8, 0], sizes = [8, 128], strides = [1, 1]} : vector<16x128xf32> to vector<8x128xf32>
    %c1_25 = arith.constant 1 : index
    %c0_26 = arith.constant 0 : index
    %c0_27 = arith.constant 0 : index
    %31 = vector.load %arg5[%c1_25, %c0_26, %c0_27] : memref<2x8x128xf32, #tpu.memory_space<vmem>>, vector<1x8x128xf32>
    %32 = vector.shape_cast %31 : vector<1x8x128xf32> to vector<8x128xf32>
    %33 = vector.shape_cast %30 : vector<8x128xf32> to vector<1x8x128xf32>
    tpu.vector_store %arg5[%c1_25, %c0_26, %c0_27], %33 {strides = array<i32>} : memref<2x8x128xf32, #tpu.memory_space<vmem>>, vector<1x8x128xf32>,
    return
  }
}

</mosaic_0001>

<bundles_post_ra>
// kernel: _forward_impl.1
= control target key start
LH: loop header
LB: loop body
LE: loop exit
PB: predicated region body
PF: predicated region fallthrough
CT: control target
= control target key end

     0   :  { %11 = vsyncpa [#allocation3], 0  ;;  %s1509_s0 = inlined_call_operand.vmem [shape: s32[16,1], index: 0, kind: input, shape index: {}]   ;;  %s1510_s1 = inlined_call_operand.hbm [shape: bf16[2,128,256], index: 1, kind: input, shape index: {}]   ;;  %s1511_s2 = inlined_call_operand.hbm [shape: bf16[2,256,128], index: 2, kind: input, shape index: {}]   ;;  %s1512_s3 = inlined_call_operand.hbm [shape: f32[32,128], index: 3, kind: input, shape index: {}]   ;;  %s1513_s4 = inlined_call_operand.hbm [shape: bf16[2,128,128], index: 4, kind: output, shape index: {0}]   ;;  %s1514_s5 = inlined_call_operand.hbm [shape: f32[2,8,128], index: 5, kind: output, shape index: {1}]  }
   0x1   :  { %12 = vsyncpa [#allocation6], 0 }
   0x2   :  { %13 = vsyncpa [#allocation4], 0  ;;  %s34_s20 = sshll.u32 %s1511_s2, 4  ;;  %s35_s20 = int_to_ptr.hbm [resolvable:$true] %s34_s20 }
   0x3   :  { %14 = vsyncpa [#allocation10], 0  ;;  %s1432_s21 = smov [#allocation5]   ;;  %s21_s25 = sshll.u32 %s1510_s1, 4  ;;  %s22_s25 = int_to_ptr.hbm [resolvable:$true] %s21_s25 }
   0x4   :  { %s36_s22 = sshll.u32 %s1432_s21, 4  ;;  %s1433_s26 = smov 64   ;;  %s37_s22 = int_to_ptr.vmem [resolvable:$true] %s36_s22 }
   0x5   :  { %s1434_s27 = smov 4   ;;  %s1435_s28 = smov [#allocation2]  }
   0x6   :  { %42 = dma.hbm_to_vmem [thread:$0]  %s35_s20, 4096, %s37_s22, [#allocation6], %s1433_s26, %s1433_s26, %s1434_s27  }
   0x7   :  { %s23_s29 = sshll.u32 %s1435_s28, 4  ;;  %s1436_s2 = smov 128   ;;  %s24_s29 = int_to_ptr.vmem [resolvable:$true] %s23_s29 }
   0x8   :  { %s1437_s30 = smov 8   ;;  %s47_s1 = sshll.u32 %s1512_s3, 4  ;;  %s48_s1 = int_to_ptr.hbm [resolvable:$true] %s47_s1 }
   0x9   :  { %29 = dma.hbm_to_vmem [thread:$0]  %s22_s25, 4096, %s24_s29, [#allocation3], %s1436_s2, %s1436_s2, %s1437_s30  }
   0xa   :  { %s1438_s8 = smov [#allocation7]  }
   0xb   :  { %s49_s9 = sshll.u32 %s1438_s8, 4  ;;  %s50_s9 = int_to_ptr.vmem [resolvable:$true] %s49_s9 }
   0xc   :  { %55 = dma.hbm_to_vmem [thread:$0]  %s48_s1, 512, %s50_s9, [#allocation6], %s1436_s2, %s1436_s2, %s1437_s30  }
   0xd   :  { %1424 = dma.done.wait [#allocation3], 4096  }
   0xe   :  { %1425 = vsyncadd [#allocation3], 4294963200 }
   0xf   :  { %1426 = dma.done.wait [#allocation6], 4608  }
  0x10   :  { %1427 = vsyncadd [#allocation6], 4294962688  ;;  %v1439_v0 = vmov 0   ;;  %v1153_v1 = vld [vmem:[#allocation5 + $0x38] sm:$0xff]  ;;  %v1152_v5 = vld [vmem:[#allocation5 + $0x30] sm:$0xff]  ;;  %vm799_vm2 = vcmask 261120  }
  0x11   :  { %1303 = vset.pattern.permute.xlu0 %v1439_v0  ;;  %v1161_v2 = vld [vmem:[#allocation5 + $0x78] sm:$0xff]  ;;  %292 = vmatpush.bf16.msra.mxu0 %v1153_v1  ;;  %v1160_v6 = vld [vmem:[#allocation5 + $0x70] sm:$0xff]  ;;  %v1151_v9 = vld [vmem:[#allocation5 + $0x28] sm:$0xff]  ;;  %s851_s16 = sshll.u32 %s1514_s5, 4  ;;  %s1442_s17 = smov [#allocation8]   ;;  %s852_s16 = int_to_ptr.hbm [resolvable:$true] %s851_s16 }
  0x12   :  { %v1185_v3 = vld [vmem:[#allocation5 + $0xb8] sm:$0xff]  ;;  %341 = vmatpush.bf16.msra.mxu1 %v1161_v2  ;;  %v1184_v7 = vld [vmem:[#allocation5 + $0xb0] sm:$0xff]  ;;  %v1159_v10 = vld [vmem:[#allocation5 + $0x68] sm:$0xff]  ;;  %s836_s18 = sshll.u32 %s1442_s17, 4  ;;  %s838_s21 = sshll.u32 %s1513_s4, 4  ;;  %s837_s18 = int_to_ptr.vmem [resolvable:$true] %s836_s18  ;;  %s839_s21 = int_to_ptr.hbm [resolvable:$true] %s838_s21 }
  0x13   :  { %v1193_v4 = vld [vmem:[#allocation5 + $0xf8] sm:$0xff]  ;;  %648 = vmatpush.bf16.msra.mxu2 %v1185_v3  ;;  %v1192_v8 = vld [vmem:[#allocation5 + $0xf0] sm:$0xff]  ;;  %v1183_v11 = vld [vmem:[#allocation5 + $0xa8] sm:$0xff] }
  0x14   :  { %697 = vmatpush.bf16.msra.mxu3 %v1193_v4  ;;  %v1191_v12 = vld [vmem:[#allocation5 + $0xe8] sm:$0xff]  ;;  %v779_v13 = vld [vmem:[%s1509_s0] sm:$0xff]  ;;  %v1149_v18 = vld [vmem:[#allocation5 + $0x18] sm:$0xff] }
  0x15   :  { %293 = vmatpush.bf16.msra.mxu0 %v1152_v5  ;;  %v1150_v14 = vld [vmem:[#allocation5 + $0x20] sm:$0xff]  ;;  %788 = vperm.xlu0 %1303, %v779_v13   ;;  %v1157_v19 = vld [vmem:[#allocation5 + $0x58] sm:$0xff]  ;;  %v780_v22 = vld [vmem:[%s1509_s0 + $0x8] sm:$0xff]  ;;  %s1441_s0 = smov [#allocation9]  }
  0x16   :  { %342 = vmatpush.bf16.msra.mxu1 %v1160_v6  ;;  %v1158_v15 = vld [vmem:[#allocation5 + $0x60] sm:$0xff]  ;;  %v1181_v20 = vld [vmem:[#allocation5 + $0x98] sm:$0xff]  ;;  %v1148_v23 = vld [vmem:[#allocation5 + $0x10] sm:$0xff]  ;;  %s849_s13 = sshll.u32 %s1441_s0, 4  ;;  %s850_s13 = int_to_ptr.vmem [resolvable:$true] %s849_s13 }
  0x17   :  { %649 = vmatpush.bf16.msra.mxu2 %v1184_v7  ;;  %v1182_v16 = vld [vmem:[#allocation5 + $0xa0] sm:$0xff]  ;;  %v1189_v21 = vld [vmem:[#allocation5 + $0xd8] sm:$0xff]  ;;  %v1156_v24 = vld [vmem:[#allocation5 + $0x50] sm:$0xff] }
  0x18   :  { %698 = vmatpush.bf16.msra.mxu3 %v1192_v8  ;;  %v1190_v17 = vld [vmem:[#allocation5 + $0xe0] sm:$0xff]  ;;  %v1180_v25 = vld [vmem:[#allocation5 + $0x90] sm:$0xff]  ;;  %v1147_v27 = vld [vmem:[#allocation5 + $0x8] sm:$0xff] }
  0x19   :  { %294 = vmatpush.bf16.msra.mxu0 %v1151_v9  ;;  %v1188_v26 = vld [vmem:[#allocation5 + $0xd0] sm:$0xff]  ;;  %v1155_v28 = vld [vmem:[#allocation5 + $0x48] sm:$0xff]  ;;  %v1146_v31 = vld [vmem:[#allocation5] sm:$0xff] }
  0x1a   :  { %343 = vmatpush.bf16.msra.mxu1 %v1159_v10  ;;  %v1179_v29 = vld [vmem:[#allocation5 + $0x88] sm:$0xff]  ;;  %v1154_v32 = vld [vmem:[#allocation5 + $0x40] sm:$0xff]  ;;  %v784_v45 = vld [vmem:[#allocation7 + $0x18] sm:$0xff] }
  0x1b   :  { %650 = vmatpush.bf16.msra.mxu2 %v1183_v11  ;;  %v1187_v30 = vld [vmem:[#allocation5 + $0xc8] sm:$0xff]  ;;  %v1178_v33 = vld [vmem:[#allocation5 + $0x80] sm:$0xff]  ;;  %v783_v48 = vld [vmem:[#allocation7 + $0x10] sm:$0xff] }
  0x1c   :  { %699 = vmatpush.bf16.msra.mxu3 %v1191_v12  ;;  %v1186_v34 = vld [vmem:[#allocation5 + $0xc0] sm:$0xff]  ;;  %v1131_v36 = vld [vmem:[#allocation2 + $0x4] sm:$0xf0]  ;;  %v874_v38 = vld [vmem:[#allocation2 + $0x8] sm:$0xf0] }
  0x1d   :  { %295 = vmatpush.bf16.msra.mxu0 %v1150_v14  ;;  %791 = vperm.xlu0 %1303, %v780_v22   ;;  %v872_v35 = vld [vmem:[#allocation2] sm:$0xf]  ;;  %v1130_v37 = vld [vmem:[#allocation2 + $0x4] sm:$0xf]  ;;  %v1163_v40 = vld [vmem:[#allocation2 + $0x84] sm:$0xf0] }
  0x1e   :  { %344 = vmatpush.bf16.msra.mxu1 %v1158_v15  ;;  %v1000_v39 = vld [vmem:[#allocation2 + $0x80] sm:$0xf]  ;;  %v1162_v41 = vld [vmem:[#allocation2 + $0x84] sm:$0xf]  ;;  %v1002_v42 = vld [vmem:[#allocation2 + $0x88] sm:$0xf0]  ;;  %v873_v43 = vor.u32 %v1131_v36, %v872_v35  ;;  %v877_v44 = vor.u32 %v1130_v37, %v874_v38 }
  0x1f   :  { %651 = vmatpush.bf16.msra.mxu2 %v1182_v16  ;;  %v1001_v46 = vor.u32 %v1163_v40, %v1000_v39  ;;  %v1005_v47 = vor.u32 %v1162_v41, %v1002_v42  ;;  %v880_v49 = vld [vmem:[#allocation2 + $0x10] sm:$0xf]  ;;  %v1133_v50 = vld [vmem:[#allocation2 + $0x14] sm:$0xf0]  ;;  %v1132_v51 = vld [vmem:[#allocation2 + $0x14] sm:$0xf] }
  0x20   :  { %700 = vmatpush.bf16.msra.mxu3 %v1190_v17  ;;  %v882_v52 = vld [vmem:[#allocation2 + $0x18] sm:$0xf0]  ;;  %v1008_v53 = vld [vmem:[#allocation2 + $0x90] sm:$0xf]  ;;  %v1165_v54 = vld [vmem:[#allocation2 + $0x94] sm:$0xf0]  ;;  %v881_v57 = vor.u32 %v1133_v50, %v880_v49 }
  0x21   :  { %296 = vmatpush.bf16.msra.mxu0 %v1149_v18  ;;  %v1164_v55 = vld [vmem:[#allocation2 + $0x94] sm:$0xf]  ;;  %v1010_v56 = vld [vmem:[#allocation2 + $0x98] sm:$0xf0]  ;;  %v885_v58 = vor.u32 %v1132_v51, %v882_v52  ;;  %v1009_v59 = vor.u32 %v1165_v54, %v1008_v53  ;;  %v888_v61 = vld [vmem:[#allocation2 + $0x20] sm:$0xf] }
  0x22   :  { %345 = vmatpush.bf16.msra.mxu1 %v1157_v19  ;;  %v1013_v60 = vor.u32 %v1164_v55, %v1010_v56  ;;  %v1135_v62 = vld [vmem:[#allocation2 + $0x24] sm:$0xf0]  ;;  %v1134_v63 = vld [vmem:[#allocation2 + $0x24] sm:$0xf]  ;;  %v890_v0 = vld [vmem:[#allocation2 + $0x28] sm:$0xf0] }
  0x23   :  { %652 = vmatpush.bf16.msra.mxu2 %v1181_v20  ;;  %v1016_v1 = vld [vmem:[#allocation2 + $0xa0] sm:$0xf]  ;;  %v1167_v2 = vld [vmem:[#allocation2 + $0xa4] sm:$0xf0]  ;;  %v1166_v3 = vld [vmem:[#allocation2 + $0xa4] sm:$0xf]  ;;  %v889_v5 = vor.u32 %v1135_v62, %v888_v61  ;;  %v893_v6 = vor.u32 %v1134_v63, %v890_v0 }
  0x24   :  { %701 = vmatpush.bf16.msra.mxu3 %v1189_v21  ;;  %v1018_v4 = vld [vmem:[#allocation2 + $0xa8] sm:$0xf0]  ;;  %v1017_v7 = vor.u32 %v1167_v2, %v1016_v1  ;;  %v896_v10 = vld [vmem:[#allocation2 + $0x30] sm:$0xf]  ;;  %v1137_v11 = vld [vmem:[#allocation2 + $0x34] sm:$0xf0] }
  0x25   :  { %297 = vmatpush.bf16.msra.mxu0 %v1148_v23  ;;  %v1021_v8 = vor.u32 %v1166_v3, %v1018_v4  ;;  %v782_v9 = vld [vmem:[#allocation7 + $0x8] sm:$0xff]  ;;  %v1136_v12 = vld [vmem:[#allocation2 + $0x34] sm:$0xf]  ;;  %v898_v13 = vld [vmem:[#allocation2 + $0x38] sm:$0xf0]  ;;  %v897_v18 = vor.u32 %v1137_v11, %v896_v10 }
  0x26   :  { %346 = vmatpush.bf16.msra.mxu1 %v1156_v24  ;;  %v1024_v14 = vld [vmem:[#allocation2 + $0xb0] sm:$0xf]  ;;  %v1169_v15 = vld [vmem:[#allocation2 + $0xb4] sm:$0xf0]  ;;  %v1168_v16 = vld [vmem:[#allocation2 + $0xb4] sm:$0xf]  ;;  %v901_v19 = vor.u32 %v1136_v12, %v898_v13 }
  0x27   :  { %653 = vmatpush.bf16.msra.mxu2 %v1180_v25  ;;  %v1026_v17 = vld [vmem:[#allocation2 + $0xb8] sm:$0xf0]  ;;  %v1025_v20 = vor.u32 %v1169_v15, %v1024_v14  ;;  %v904_v22 = vld [vmem:[#allocation2 + $0x40] sm:$0xf]  ;;  %v1139_v23 = vld [vmem:[#allocation2 + $0x44] sm:$0xf0] }
  0x28   :  { %702 = vmatpush.bf16.msra.mxu3 %v1188_v26  ;;  %v1029_v21 = vor.u32 %v1168_v16, %v1026_v17  ;;  %v1138_v24 = vld [vmem:[#allocation2 + $0x44] sm:$0xf]  ;;  %v906_v25 = vld [vmem:[#allocation2 + $0x48] sm:$0xf0]  ;;  %v1032_v26 = vld [vmem:[#allocation2 + $0xc0] sm:$0xf] }
  0x29   :  { %298 = vmatpush.bf16.msra.mxu0 %v1147_v27  ;;  %v1171_v27 = vld [vmem:[#allocation2 + $0xc4] sm:$0xf0]  ;;  %v912_v35 = vld [vmem:[#allocation2 + $0x50] sm:$0xf]  ;;  %v1141_v36 = vld [vmem:[#allocation2 + $0x54] sm:$0xf0] }
  0x2a   :  { %347 = vmatpush.bf16.msra.mxu1 %v1155_v28  ;;  %v1170_v28 = vld [vmem:[#allocation2 + $0xc4] sm:$0xf]  ;;  %v1140_v37 = vld [vmem:[#allocation2 + $0x54] sm:$0xf]  ;;  %v914_v38 = vld [vmem:[#allocation2 + $0x58] sm:$0xf0] }
  0x2b   :  { %654 = vmatpush.bf16.msra.mxu2 %v1179_v29  ;;  %v1034_v29 = vld [vmem:[#allocation2 + $0xc8] sm:$0xf0]  ;;  %v1040_v39 = vld [vmem:[#allocation2 + $0xd0] sm:$0xf]  ;;  %v1173_v40 = vld [vmem:[#allocation2 + $0xd4] sm:$0xf0] }
  0x2c   :  { %703 = vmatpush.bf16.msra.mxu3 %v1187_v30  ;;  %v905_v30 = vor.u32 %v1139_v23, %v904_v22  ;;  %v1172_v41 = vld [vmem:[#allocation2 + $0xd4] sm:$0xf]  ;;  %v1042_v42 = vld [vmem:[#allocation2 + $0xd8] sm:$0xf0]  ;;  %v1142_v49 = vld [vmem:[#allocation2 + $0x64] sm:$0xf] }
  0x2d   :  { %299 = vmatpush.bf16.msra.mxu0 %v1146_v31  ;;  %v909_v31 = vor.u32 %v1138_v24, %v906_v25  ;;  %v922_v50 = vld [vmem:[#allocation2 + $0x68] sm:$0xf0]  ;;  %v1048_v51 = vld [vmem:[#allocation2 + $0xe0] sm:$0xf]  ;;  %v1175_v52 = vld [vmem:[#allocation2 + $0xe4] sm:$0xf0] }
  0x2e   :  { %348 = vmatpush.bf16.msra.mxu1 %v1154_v32  ;;  %v1033_v32 = vor.u32 %v1171_v27, %v1032_v26  ;;  %v1174_v53 = vld [vmem:[#allocation2 + $0xe4] sm:$0xf]  ;;  %v1050_v54 = vld [vmem:[#allocation2 + $0xe8] sm:$0xf0]  ;;  %v925_v56 = vor.u32 %v1142_v49, %v922_v50  ;;  %v1144_v61 = vld [vmem:[#allocation2 + $0x74] sm:$0xf] }
  0x2f   :  { %655 = vmatpush.bf16.msra.mxu2 %v1178_v33  ;;  %v1037_v33 = vor.u32 %v1170_v28, %v1034_v29  ;;  %v930_v62 = vld [vmem:[#allocation2 + $0x78] sm:$0xf0]  ;;  %v1056_v63 = vld [vmem:[#allocation2 + $0xf0] sm:$0xf]  ;;  %v1177_v0 = vld [vmem:[#allocation2 + $0xf4] sm:$0xf0] }
  0x30   :  { %704 = vmatpush.bf16.msra.mxu3 %v1186_v34  ;;  %300 = vmatmul.bf16.vlgmr.msra.gmra.mxu0 %v873_v43  ;;  %v781_v34 = vld [vmem:[#allocation7] sm:$0xff]  ;;  %v913_v43 = vor.u32 %v1141_v36, %v912_v35  ;;  %v1176_v1 = vld [vmem:[#allocation2 + $0xf4] sm:$0xf]  ;;  %v1058_v2 = vld [vmem:[#allocation2 + $0xf8] sm:$0xf0]  ;;  %v933_v4 = vor.u32 %v1144_v61, %v930_v62  ;;  %v1440_v13 = vmov 0.0  }
  0x31   :  { %818 = vmatpush.msrb.mxu0 %v784_v45  ;;  %349 = vmatmul.bf16.vlgmr.msra.gmra.mxu1 %v877_v44  ;;  %v917_v44 = vor.u32 %v1140_v37, %v914_v38 }
  0x32   :  { %1288 = vmatpush.msrb.mxu1 %v784_v45  ;;  %656 = vmatmul.bf16.vlgmr.msra.gmra.mxu2 %v1001_v46  ;;  %v1041_v45 = vor.u32 %v1173_v40, %v1040_v39  ;;  %v1045_v46 = vor.u32 %v1172_v41, %v1042_v42 }
  0x33   :  { %705 = vmatmul.bf16.vlgmr.msra.gmra.mxu3 %v1005_v47  ;;  %819 = vmatpush.msrb.mxu0 %v783_v48  ;;  %v920_v47 = vld [vmem:[#allocation2 + $0x60] sm:$0xf] }
  0x34   :  { %1289 = vmatpush.msrb.mxu1 %v783_v48  ;;  %v1143_v48 = vld [vmem:[#allocation2 + $0x64] sm:$0xf0] }
  0x35   :  { %820 = vmatpush.msrb.mxu0 %v782_v9  ;;  %v921_v55 = vor.u32 %v1143_v48, %v920_v47 }
  0x36   :  { %1290 = vmatpush.msrb.mxu1 %v782_v9 }
  0x37   :  { %821 = vmatpush.msrb.mxu0 %v781_v34 }
  0x38   :  { %1291 = vmatpush.msrb.mxu1 %v781_v34 }
  0x40   :  { %305 = vmatmul.bf16.gmra.mxu0 %v881_v57  ;;  %v1049_v57 = vor.u32 %v1175_v52, %v1048_v51 }
  0x41   :  { %354 = vmatmul.bf16.gmra.mxu1 %v885_v58  ;;  %v1053_v58 = vor.u32 %v1174_v53, %v1050_v54 }
  0x42   :  { %661 = vmatmul.bf16.gmra.mxu2 %v1009_v59  ;;  %v928_v59 = vld [vmem:[#allocation2 + $0x70] sm:$0xf] }
  0x43   :  { %710 = vmatmul.bf16.gmra.mxu3 %v1013_v60  ;;  %v1145_v60 = vld [vmem:[#allocation2 + $0x74] sm:$0xf0] }
  0x44   :  { %v929_v3 = vor.u32 %v1145_v60, %v928_v59 }
  0x50   :  { %310 = vmatmul.bf16.gmra.mxu0 %v889_v5  ;;  %v1057_v5 = vor.u32 %v1177_v0, %v1056_v63 }
  0x51   :  { %359 = vmatmul.bf16.gmra.mxu1 %v893_v6  ;;  %v1061_v6 = vor.u32 %v1176_v1, %v1058_v2 }
  0x52   :  { %666 = vmatmul.bf16.gmra.mxu2 %v1017_v7 }
  0x53   :  { %715 = vmatmul.bf16.gmra.mxu3 %v1021_v8  ;;  %v785_v8 = vlaneseq }
  0x55   :  { %v786_v9 = vand.u32 127, %v785_v8 }
  0x60   :  { %315 = vmatmul.bf16.gmra.mxu0 %v897_v18 }
  0x61   :  { %364 = vmatmul.bf16.gmra.mxu1 %v901_v19 }
  0x62   :  { %671 = vmatmul.bf16.gmra.mxu2 %v1025_v20 }
  0x63   :  { %720 = vmatmul.bf16.gmra.mxu3 %v1029_v21 }
  0x70   :  { %320 = vmatmul.bf16.gmra.mxu0 %v905_v30 }
  0x71   :  { %369 = vmatmul.bf16.gmra.mxu1 %v909_v31 }
  0x72   :  { %676 = vmatmul.bf16.gmra.mxu2 %v1033_v32 }
  0x73   :  { %725 = vmatmul.bf16.gmra.mxu3 %v1037_v33 }
  0x80   :  { %325 = vmatmul.bf16.gmra.mxu0 %v913_v43 }
  0x81   :  { %374 = vmatmul.bf16.gmra.mxu1 %v917_v44 }
  0x82   :  { %681 = vmatmul.bf16.gmra.mxu2 %v1041_v45 }
  0x83   :  { %730 = vmatmul.bf16.gmra.mxu3 %v1045_v46 }
  0x87   :  { %v789_v7 = vpop.permute.xlu0 %788 }
  0x88   :  { %vm793_vm0 = vcmp.eq.s32.totalorder %v786_v9, %v789_v7 }
  0x89   :  { %v1126_v14 = vsel %vm793_vm0, 1.0, %v1440_v13 }
  0x8f   :  { %v792_v10 = vpop.permute.xlu0 %791 }
  0x90   :  { %330 = vmatmul.bf16.gmra.mxu0 %v921_v55  ;;  %vm794_vm1 = vcmp.eq.s32.totalorder %v786_v9, %v792_v10 }
  0x91   :  { %379 = vmatmul.bf16.gmra.mxu1 %v925_v56  ;;  %v1127_v15 = vsel %vm794_vm1, 1.0, %v1440_v13 }
  0x92   :  { %686 = vmatmul.bf16.gmra.mxu2 %v1049_v57 }
  0x93   :  { %735 = vmatmul.bf16.gmra.mxu3 %v1053_v58 }
  0xa0   :  { %335 = vmatmul.bf16.gmra.mxu0 %v929_v3 }
  0xa1   :  { %384 = vmatmul.bf16.gmra.mxu1 %v933_v4 }
  0xa2   :  { %691 = vmatmul.bf16.gmra.mxu2 %v1057_v5 }
  0xa3   :  { %740 = vmatmul.bf16.gmra.mxu3 %v1061_v6 }
  0xad   :  { %v301_v11 = vpop.f32.mrf.mxu0 }
  0xae   :  { %v350_v12 = vpop.f32.mrf.mxu1 }
  0xaf   :  { %v351_v20 = vadd.f32 %v350_v12, %v301_v11 }
  0xb0   :  { %1128 = vmatmul.msk.f32.vlgmr.msrb.gmra.mxu0 %vm799_vm2, %v1126_v14 }
  0xb1   :  { %1129 = vmatmul.msk.f32.vlgmr.msrb.gmra.mxu1 %vm799_vm2, %v1127_v15 }
  0xb5   :  { %v657_v16 = vpop.f32.mrf.mxu2  ;;  %v303_v18 = vpop.f32.mrf.mxu0 }
  0xb6   :  { %v706_v17 = vpop.f32.mrf.mxu3  ;;  %v352_v19 = vpop.f32.mrf.mxu1 }
  0xb7   :  { %v353_v21 = vadd.f32 %v352_v19, %v303_v18  ;;  %v707_v25 = vadd.f32 %v706_v17, %v657_v16 }
  0xb9   :  { %v1197_v22 = vpack.c.bf16 %v353_v21, %v351_v20 }
  0xbb   :  { %1198 = vst [vmem:[#allocation8] sm:$0xff] %v1197_v22  }
  0xbd   :  { %v659_v23 = vpop.f32.mrf.mxu2  ;;  %v306_v27 = vpop.f32.mrf.mxu0 }
  0xbe   :  { %v708_v24 = vpop.f32.mrf.mxu3  ;;  %v355_v28 = vpop.f32.mrf.mxu1 }
  0xbf   :  { %v709_v26 = vadd.f32 %v708_v24, %v659_v23  ;;  %v356_v34 = vadd.f32 %v355_v28, %v306_v27 }
  0xc1   :  { %v1237_v29 = vpack.c.bf16 %v709_v26, %v707_v25 }
  0xc3   :  { %1238 = vst [vmem:[#allocation8 + $0x40] sm:$0xff] %v1237_v29  }
  0xc5   :  { %v662_v30 = vpop.f32.mrf.mxu2  ;;  %v308_v32 = vpop.f32.mrf.mxu0 }
  0xc6   :  { %v711_v31 = vpop.f32.mrf.mxu3  ;;  %v357_v33 = vpop.f32.mrf.mxu1 }
  0xc7   :  { %v358_v35 = vadd.f32 %v357_v33, %v308_v32  ;;  %v712_v39 = vadd.f32 %v711_v31, %v662_v30 }
  0xc9   :  { %v1202_v36 = vpack.c.bf16 %v358_v35, %v356_v34 }
  0xcb   :  { %1274 = vst [vmem:[#allocation8 + $0x8] sm:$0xff] %v1202_v36  }
  0xcd   :  { %v664_v37 = vpop.f32.mrf.mxu2  ;;  %v311_v41 = vpop.f32.mrf.mxu0 }
  0xce   :  { %v713_v38 = vpop.f32.mrf.mxu3  ;;  %v360_v42 = vpop.f32.mrf.mxu1 }
  0xcf   :  { %v714_v40 = vadd.f32 %v713_v38, %v664_v37  ;;  %v361_v48 = vadd.f32 %v360_v42, %v311_v41 }
  0xd1   :  { %v1242_v43 = vpack.c.bf16 %v714_v40, %v712_v39 }
  0xd3   :  { %1281 = vst [vmem:[#allocation8 + $0x48] sm:$0xff] %v1242_v43  }
  0xd5   :  { %v667_v44 = vpop.f32.mrf.mxu2  ;;  %v313_v46 = vpop.f32.mrf.mxu0 }
  0xd6   :  { %v716_v45 = vpop.f32.mrf.mxu3  ;;  %v362_v47 = vpop.f32.mrf.mxu1 }
  0xd7   :  { %v363_v49 = vadd.f32 %v362_v47, %v313_v46  ;;  %v717_v53 = vadd.f32 %v716_v45, %v667_v44 }
  0xd9   :  { %v1207_v50 = vpack.c.bf16 %v363_v49, %v361_v48 }
  0xdb   :  { %1275 = vst [vmem:[#allocation8 + $0x10] sm:$0xff] %v1207_v50  }
  0xdd   :  { %v669_v51 = vpop.f32.mrf.mxu2  ;;  %v316_v55 = vpop.f32.mrf.mxu0 }
  0xde   :  { %v718_v52 = vpop.f32.mrf.mxu3  ;;  %v365_v56 = vpop.f32.mrf.mxu1 }
  0xdf   :  { %v719_v54 = vadd.f32 %v718_v52, %v669_v51  ;;  %v366_v62 = vadd.f32 %v365_v56, %v316_v55 }
  0xe1   :  { %v1247_v57 = vpack.c.bf16 %v719_v54, %v717_v53 }
  0xe3   :  { %1282 = vst [vmem:[#allocation8 + $0x50] sm:$0xff] %v1247_v57  }
  0xe5   :  { %v672_v58 = vpop.f32.mrf.mxu2  ;;  %v318_v60 = vpop.f32.mrf.mxu0 }
  0xe6   :  { %v721_v59 = vpop.f32.mrf.mxu3  ;;  %v367_v61 = vpop.f32.mrf.mxu1 }
  0xe7   :  { %v368_v63 = vadd.f32 %v367_v61, %v318_v60  ;;  %v722_v3 = vadd.f32 %v721_v59, %v672_v58 }
  0xe9   :  { %v1212_v0 = vpack.c.bf16 %v368_v63, %v366_v62 }
  0xeb   :  { %1276 = vst [vmem:[#allocation8 + $0x18] sm:$0xff] %v1212_v0  }
  0xed   :  { %v674_v1 = vpop.f32.mrf.mxu2  ;;  %v321_v5 = vpop.f32.mrf.mxu0 }
  0xee   :  { %v723_v2 = vpop.f32.mrf.mxu3  ;;  %v370_v6 = vpop.f32.mrf.mxu1 }
  0xef   :  { %v724_v4 = vadd.f32 %v723_v2, %v674_v1  ;;  %v371_v12 = vadd.f32 %v370_v6, %v321_v5 }
  0xf1   :  { %v1252_v7 = vpack.c.bf16 %v724_v4, %v722_v3 }
  0xf3   :  { %1283 = vst [vmem:[#allocation8 + $0x58] sm:$0xff] %v1252_v7  }
  0xf5   :  { %v677_v8 = vpop.f32.mrf.mxu2  ;;  %v323_v10 = vpop.f32.mrf.mxu0 }
  0xf6   :  { %v726_v9 = vpop.f32.mrf.mxu3  ;;  %v372_v11 = vpop.f32.mrf.mxu1 }
  0xf7   :  { %v373_v13 = vadd.f32 %v372_v11, %v323_v10  ;;  %v727_v17 = vadd.f32 %v726_v9, %v677_v8 }
  0xf9   :  { %v1217_v14 = vpack.c.bf16 %v373_v13, %v371_v12 }
  0xfb   :  { %1277 = vst [vmem:[#allocation8 + $0x20] sm:$0xff] %v1217_v14  }
  0xfd   :  { %v679_v15 = vpop.f32.mrf.mxu2  ;;  %v326_v19 = vpop.f32.mrf.mxu0 }
  0xfe   :  { %v728_v16 = vpop.f32.mrf.mxu3  ;;  %v375_v20 = vpop.f32.mrf.mxu1 }
  0xff   :  { %v729_v18 = vadd.f32 %v728_v16, %v679_v15  ;;  %v376_v26 = vadd.f32 %v375_v20, %v326_v19 }
 0x101   :  { %v1257_v21 = vpack.c.bf16 %v729_v18, %v727_v17 }
 0x103   :  { %1284 = vst [vmem:[#allocation8 + $0x60] sm:$0xff] %v1257_v21  }
 0x105   :  { %v682_v22 = vpop.f32.mrf.mxu2  ;;  %v328_v24 = vpop.f32.mrf.mxu0 }
 0x106   :  { %v731_v23 = vpop.f32.mrf.mxu3  ;;  %v377_v25 = vpop.f32.mrf.mxu1 }
 0x107   :  { %v378_v27 = vadd.f32 %v377_v25, %v328_v24  ;;  %v732_v31 = vadd.f32 %v731_v23, %v682_v22 }
 0x109   :  { %v1222_v28 = vpack.c.bf16 %v378_v27, %v376_v26 }
 0x10b   :  { %1278 = vst [vmem:[#allocation8 + $0x28] sm:$0xff] %v1222_v28  }
 0x10d   :  { %v684_v29 = vpop.f32.mrf.mxu2  ;;  %v331_v33 = vpop.f32.mrf.mxu0 }
 0x10e   :  { %v733_v30 = vpop.f32.mrf.mxu3  ;;  %v380_v34 = vpop.f32.mrf.mxu1 }
 0x10f   :  { %v734_v32 = vadd.f32 %v733_v30, %v684_v29  ;;  %v381_v40 = vadd.f32 %v380_v34, %v331_v33 }
 0x111   :  { %v1262_v35 = vpack.c.bf16 %v734_v32, %v732_v31 }
 0x113   :  { %1285 = vst [vmem:[#allocation8 + $0x68] sm:$0xff] %v1262_v35  }
 0x115   :  { %v687_v36 = vpop.f32.mrf.mxu2  ;;  %v333_v38 = vpop.f32.mrf.mxu0 }
 0x116   :  { %v736_v37 = vpop.f32.mrf.mxu3  ;;  %v382_v39 = vpop.f32.mrf.mxu1 }
 0x117   :  { %v383_v41 = vadd.f32 %v382_v39, %v333_v38  ;;  %v737_v45 = vadd.f32 %v736_v37, %v687_v36 }
 0x119   :  { %v1227_v42 = vpack.c.bf16 %v383_v41, %v381_v40 }
 0x11b   :  { %1279 = vst [vmem:[#allocation8 + $0x30] sm:$0xff] %v1227_v42  }
 0x11d   :  { %v689_v43 = vpop.f32.mrf.mxu2  ;;  %v336_v47 = vpop.f32.mrf.mxu0 }
 0x11e   :  { %v738_v44 = vpop.f32.mrf.mxu3  ;;  %v385_v48 = vpop.f32.mrf.mxu1 }
 0x11f   :  { %v739_v46 = vadd.f32 %v738_v44, %v689_v43  ;;  %v386_v54 = vadd.f32 %v385_v48, %v336_v47 }
 0x121   :  { %v1267_v49 = vpack.c.bf16 %v739_v46, %v737_v45 }
 0x123   :  { %1286 = vst [vmem:[#allocation8 + $0x70] sm:$0xff] %v1267_v49  }
 0x125   :  { %v692_v50 = vpop.f32.mrf.mxu2  ;;  %v338_v52 = vpop.f32.mrf.mxu0 }
 0x126   :  { %v741_v51 = vpop.f32.mrf.mxu3  ;;  %v387_v53 = vpop.f32.mrf.mxu1 }
 0x127   :  { %v388_v55 = vadd.f32 %v387_v53, %v338_v52  ;;  %v742_v59 = vadd.f32 %v741_v51, %v692_v50 }
 0x129   :  { %v1232_v56 = vpack.c.bf16 %v388_v55, %v386_v54 }
 0x12b   :  { %1280 = vst [vmem:[#allocation8 + $0x38] sm:$0xff] %v1232_v56  }
 0x12d   :  { %v694_v57 = vpop.f32.mrf.mxu2  ;;  %v823_v61 = vpop.f32.mrf.mxu0 }
 0x12e   :  { %v743_v58 = vpop.f32.mrf.mxu3  ;;  %v826_v62 = vpop.f32.mrf.mxu1  ;;  %829 = vst [vmem:[#allocation9] sm:$0xff] %v823_v61 }
 0x12f   :  { %v744_v60 = vadd.f32 %v743_v58, %v694_v57  ;;  %831 = vst [vmem:[#allocation9 + $0x8] sm:$0xff] %v826_v62 }
 0x130   :  { %857 = dma.vmem_to_hbm [thread:$0]  %s850_s13, 256, %s852_s16, [#allocation10], %s1436_s2, %s1436_s2, %s1437_s30  }
 0x131   :  { %v1272_v63 = vpack.c.bf16 %v744_v60, %v742_v59 }
 0x133   :  { %1287 = vst [vmem:[#allocation8 + $0x78] sm:$0xff] %v1272_v63  }
 0x134   :  { %844 = dma.vmem_to_hbm [thread:$0]  %s837_s18, 2048, %s839_s21, [#allocation4], %s1433_s26, %s1433_s26, %s1434_s27  }
 0x135   :  { %1428 = dma.done.wait [#allocation4], 2048  }
 0x136   :  { %1429 = vsyncadd [#allocation4], 4294965248 }
 0x137   :  { %1430 = dma.done.wait [#allocation10], 256  }
 0x138   :  { %1431 = vsyncadd [#allocation10], 4294967040 }
 0x139   :  { %866 = vsyncpa [#allocation3], 1 }
 0x13a   :  { %867 = vsyncpa [#allocation6], 1 }
 0x13b   :  { %868 = vsyncpa [#allocation4], 1 }
 0x13c   :  { %869 = vsyncpa [#allocation10], 1 }

</bundles_post_ra>
